<compile_context>
chip_gen: v5e
topology: v5e:2x2
jax: 0.10.0
libtpu: 0.0.40
codegen_flags: <defaults>
</compile_context>

<pallas_src>
import math

import jax
import jax.numpy as jnp
from jax.experimental import pallas as pl
from jax.experimental.pallas import tpu as pltpu


# ------------------------------ fused kernel -------------------------------
def _attention_kernel(hid_ref, eo_ref, whT_ref, weT_ref, b_ref, v_ref,
                      out_ref):
    # Per grid step (BI = query-row block, full S keys):
    #   hid_ref : (BI, D)      hidden rows i of this block
    #   eo_ref  : (S, BI, D)   eo_ref[j, i, :] = encoder_outputs[j, i, :]
    #   whT_ref : (D, H)   weT_ref : (D, H)   b_ref : (1, H)   v_ref : (H, 1)
    #   out_ref : (BI, S)  softmax(energy, dim=1) rows for this block
    S = eo_ref.shape[0]
    BI = hid_ref.shape[0]

    weT = weT_ref[...]
    v_col = v_ref[...]

    # Hidden-half projection: computed exactly once per query row.
    hid_proj = (jnp.dot(hid_ref[...], whT_ref[...],
                        preferred_element_type=jnp.float32)
                + b_ref[...])                                    # (BI, H)

    # energy[i, j] = v . tanh(Wh@hidden[i] + We@EO[j, i] + b)
    # Build the (BI, S) energy block one key column j at a time: each column
    # comes out with query rows already on sublanes, so no transposes /
    # reshapes of loaded data are needed.  Column placement uses a lane-iota
    # select (pure VPU ops).  S is small for this module, so the static unroll
    # is cheap; for large S this axis would become a key-block grid dimension.
    col_ids = jax.lax.broadcasted_iota(jnp.int32, (BI, S), 1)
    energy = jnp.zeros((BI, S), jnp.float32)
    for j in range(S):
        pre = hid_proj + jnp.dot(eo_ref[j], weT,
                                 preferred_element_type=jnp.float32)  # (BI, H)
        col = jnp.dot(jnp.tanh(pre), v_col,
                      preferred_element_type=jnp.float32)             # (BI, 1)
        energy = jnp.where(col_ids == j, col, energy)

    # F.softmax(energy, dim=1): softmax over keys j (lane axis).
    m = jnp.max(energy, axis=-1, keepdims=True)
    p = jnp.exp(energy - m)
    out_ref[...] = p / jnp.sum(p, axis=-1, keepdims=True)


# --------------------------------- wrapper ----------------------------------
def prepare_attention_params(params):
    """One-time (outside jit) weight packing: split W_att into its two halves.

    Only tiny slices / transposes — nothing scales with S and nothing is
    re-executed per forward call.
    """
    H, D2 = params["w_att"].shape
    D = D2 // 2
    return {
        "whT": jnp.asarray(params["w_att"][:, :D].T, jnp.float32),   # (D, H)
        "weT": jnp.asarray(params["w_att"][:, D:].T, jnp.float32),   # (D, H)
        "b": jnp.asarray(params["b_att"].reshape(1, H), jnp.float32),
        "v": jnp.asarray(params["v"].reshape(H, 1), jnp.float32),
    }


def attention_forward(packed, hidden, encoder_outputs, window_size=10,
                      block_rows=None):
    """hidden: (S, 2H) f32, encoder_outputs: (S, S, 2H) f32 -> (S, 1, S) f32."""
    del window_size  # windowed recomputation is value-preserving (see header)

    S, D = hidden.shape
    assert encoder_outputs.shape == (S, S, D), encoder_outputs.shape
    H = packed["whT"].shape[1]
    assert packed["whT"].shape == (D, H) and packed["weT"].shape == (D, H)

    BI = S if block_rows is None else block_rows
    assert S % BI == 0
    grid = (S // BI,)

    probs = pl.pallas_call(
        _attention_kernel,
        out_shape=jax.ShapeDtypeStruct((S, S), jnp.float32),
        grid_spec=pltpu.PrefetchScalarGridSpec(
            num_scalar_prefetch=0,
            grid=grid,
            in_specs=[
                pl.BlockSpec((BI, D), lambda r: (r, 0)),        # hidden rows
                pl.BlockSpec((S, BI, D), lambda r: (0, r, 0)),  # EO[:, rows, :]
                pl.BlockSpec((D, H), lambda r: (0, 0)),         # Wh^T (resident)
                pl.BlockSpec((D, H), lambda r: (0, 0)),         # We^T (resident)
                pl.BlockSpec((1, H), lambda r: (0, 0)),         # bias
                pl.BlockSpec((H, 1), lambda r: (0, 0)),         # v
            ],
            out_specs=pl.BlockSpec((BI, S), lambda r: (r, 0)),
        ),
        compiler_params=pltpu.CompilerParams(
            dimension_semantics=("parallel",)),
    )(hidden, encoder_outputs, packed["whT"], packed["weT"],
      packed["b"], packed["v"])

    return probs[:, None, :]              # .unsqueeze(1) -> (S, 1, S)


# -------------------------- pure-JAX reference ------------------------------
def attention_reference(params, hidden, encoder_outputs, window_size=10):
    """Literal transcription of the PyTorch forward (incl. windowed loop)."""
    S = encoder_outputs.shape[1]
    h = jnp.swapaxes(jnp.tile(hidden[None, :, :], (S, 1, 1)), 0, 1)
    eo = jnp.swapaxes(encoder_outputs, 0, 1)
    W, b, v = params["w_att"], params["b_att"], params["v"]
    energy = jnp.zeros(eo.shape[:2], jnp.float32)
    center = window_size // 2
    hp = jax.lax.Precision.HIGHEST
    for i in range(eo.shape[1]):
        start = max(0, i - center)
        end = min(eo.shape[1], i + center + 1)
        comb = jnp.concatenate([h[:, start:end, :], eo[:, start:end, :]],
                               axis=2)
        le = jnp.tanh(jnp.matmul(comb, W.T, precision=hp) + b)
        le = jnp.einsum("h,bwh->bw", v, le, precision=hp)
        energy = energy.at[:, start:end].set(le)
    probs = jax.nn.softmax(energy, axis=1)
    return probs[:, None, :]


# ----------------------------- param init -----------------------------------
def init_params(key, hidden_size):
    H = hidden_size
    k1, k2, k3 = jax.random.split(key, 3)
    bound = 1.0 / math.sqrt(4 * H)                 # nn.Linear(4H, H) default
    w_att = jax.random.uniform(k1, (H, 4 * H), jnp.float32, -bound, bound)
    b_att = jax.random.uniform(k2, (H,), jnp.float32, -bound, bound)
    stdv = 1.0 / math.sqrt(H)                      # v.data.normal_(0, stdv)
    v = stdv * jax.random.normal(k3, (H,), jnp.float32)
    return {"w_att": w_att, "b_att": b_att, "v": v}


if __name__ == "__main__":
    hidden_size = 32
    window_size = 10
    S = 8   # seq len; the reference's shape contract forces batch == seq

    key = jax.random.PRNGKey(0)
    pk, hk, ek = jax.random.split(key, 3)
    params = init_params(pk, hidden_size)
    packed = prepare_attention_params(params)   # hoisted out of the jitted path
    hidden = jax.random.normal(hk, (S, 2 * hidden_size), jnp.float32)
    encoder_outputs = jax.random.normal(ek, (S, S, 2 * hidden_size),
                                        jnp.float32)

    fwd = jax.jit(lambda pp, h, e: attention_forward(pp, h, e, window_size))
    out = jax.block_until_ready(fwd(packed, hidden, encoder_outputs))

    assert out.shape == (S, 1, S), out.shape
    assert bool(jnp.all(jnp.isfinite(out)))

    ref = attention_reference(params, hidden, encoder_outputs, window_size)
    err = float(jnp.max(jnp.abs(out - ref)))
    assert bool(jnp.allclose(out, ref, atol=1e-3, rtol=1e-3)), err

    print("KERNEL_OK")
</pallas_src>

<mosaic_0001>
module attributes {stable_mosaic.version = 11 : i64} {
  func.func @_attention_kernel(%arg0: i32, %arg1: memref<8x64xf32, #tpu.memory_space<vmem>>, %arg2: memref<8x8x64xf32, #tpu.memory_space<vmem>>, %arg3: memref<64x32xf32, #tpu.memory_space<vmem>>, %arg4: memref<64x32xf32, #tpu.memory_space<vmem>>, %arg5: memref<1x32xf32, #tpu.memory_space<vmem>>, %arg6: memref<32x1xf32, #tpu.memory_space<vmem>>, %arg7: memref<8x8xf32, #tpu.memory_space<vmem>>) attributes {dimension_semantics = [#tpu.dimension_semantics<parallel>], iteration_bounds = array<i64: 1>, scalar_prefetch = 0 : i64, scratch_operands = 0 : i64, tpu.core_type = #tpu.core_type<tc>, window_params = [{transform_indices = @transform_0, window_bounds = array<i64: 8, 64>}, {transform_indices = @transform_1, window_bounds = array<i64: 8, 8, 64>}, {pipeline_mode = #tpu.pipeline_mode<synchronous>, transform_indices = @transform_2, window_bounds = array<i64: 64, 32>}, {pipeline_mode = #tpu.pipeline_mode<synchronous>, transform_indices = @transform_3, window_bounds = array<i64: 64, 32>}, {pipeline_mode = #tpu.pipeline_mode<synchronous>, transform_indices = @transform_4, window_bounds = array<i64: 1, 32>}, {pipeline_mode = #tpu.pipeline_mode<synchronous>, transform_indices = @transform_5, window_bounds = array<i64: 32, 1>}, {transform_indices = @transform_6, window_bounds = array<i64: 8, 8>}]} {
    %c0 = arith.constant 0 : index
    %c0_0 = arith.constant 0 : index
    %0 = vector.load %arg4[%c0, %c0_0] : memref<64x32xf32, #tpu.memory_space<vmem>>, vector<64x32xf32>
    %c0_1 = arith.constant 0 : index
    %c0_2 = arith.constant 0 : index
    %1 = vector.load %arg6[%c0_1, %c0_2] : memref<32x1xf32, #tpu.memory_space<vmem>>, vector<32x1xf32>
    %c0_3 = arith.constant 0 : index
    %c0_4 = arith.constant 0 : index
    %2 = vector.load %arg1[%c0_3, %c0_4] : memref<8x64xf32, #tpu.memory_space<vmem>>, vector<8x64xf32>
    %c0_5 = arith.constant 0 : index
    %c0_6 = arith.constant 0 : index
    %3 = vector.load %arg3[%c0_5, %c0_6] : memref<64x32xf32, #tpu.memory_space<vmem>>, vector<64x32xf32>
    %cst = arith.constant dense<0.000000e+00> : vector<8x32xf32>
    %4 = tpu.matmul %2, %3, %cst {dimension_numbers = #tpu.dot_dimension_numbers<[1], [0], [0], [1], [0, 0, 1, 1], [], []>} : vector<8x64xf32>, vector<64x32xf32>, vector<8x32xf32> -> vector<8x32xf32>
    %c0_7 = arith.constant 0 : index
    %c0_8 = arith.constant 0 : index
    %5 = vector.load %arg5[%c0_7, %c0_8] : memref<1x32xf32, #tpu.memory_space<vmem>>, vector<1x32xf32>
    %6 = vector.broadcast %5 : vector<1x32xf32> to vector<8x32xf32>
    %7 = arith.addf %4, %6 : vector<8x32xf32>
    %8 = tpu.iota {dimensions = array<i32: 1>} : vector<8x8xi32>
    %cst_9 = arith.constant 0.000000e+00 : f32
    %9 = vector.broadcast %cst_9 : f32 to vector<8x8xf32>
    %c0_10 = arith.constant 0 : index
    %c0_11 = arith.constant 0 : index
    %c0_12 = arith.constant 0 : index
    %10 = vector.load %arg2[%c0_10, %c0_11, %c0_12] : memref<8x8x64xf32, #tpu.memory_space<vmem>>, vector<1x8x64xf32>
    %11 = vector.shape_cast %10 : vector<1x8x64xf32> to vector<8x64xf32>
    %cst_13 = arith.constant dense<0.000000e+00> : vector<8x32xf32>
    %12 = tpu.matmul %11, %0, %cst_13 {dimension_numbers = #tpu.dot_dimension_numbers<[1], [0], [0], [1], [0, 0, 1, 1], [], []>} : vector<8x64xf32>, vector<64x32xf32>, vector<8x32xf32> -> vector<8x32xf32>
    %13 = arith.addf %7, %12 : vector<8x32xf32>
    %14 = math.tanh %13 : vector<8x32xf32>
    %cst_14 = arith.constant dense<0.000000e+00> : vector<8x1xf32>
    %15 = tpu.matmul %14, %1, %cst_14 {dimension_numbers = #tpu.dot_dimension_numbers<[1], [0], [0], [1], [0, 0, 1, 1], [], []>} : vector<8x32xf32>, vector<32x1xf32>, vector<8x1xf32> -> vector<8x1xf32>
    %c0_i32 = arith.constant 0 : i32
    %16 = vector.broadcast %c0_i32 : i32 to vector<8x8xi32>
    %17 = arith.cmpi eq, %8, %16 : vector<8x8xi32>
    %18 = vector.shape_cast %15 : vector<8x1xf32> to vector<8x1xf32>
    %19 = vector.broadcast %18 : vector<8x1xf32> to vector<8x8xf32>
    %20 = arith.select %17, %19, %9 : vector<8x8xi1>, vector<8x8xf32>
    %c1 = arith.constant 1 : index
    %c0_15 = arith.constant 0 : index
    %c0_16 = arith.constant 0 : index
    %21 = vector.load %arg2[%c1, %c0_15, %c0_16] : memref<8x8x64xf32, #tpu.memory_space<vmem>>, vector<1x8x64xf32>
    %22 = vector.shape_cast %21 : vector<1x8x64xf32> to vector<8x64xf32>
    %cst_17 = arith.constant dense<0.000000e+00> : vector<8x32xf32>
    %23 = tpu.matmul %22, %0, %cst_17 {dimension_numbers = #tpu.dot_dimension_numbers<[1], [0], [0], [1], [0, 0, 1, 1], [], []>} : vector<8x64xf32>, vector<64x32xf32>, vector<8x32xf32> -> vector<8x32xf32>
    %24 = arith.addf %7, %23 : vector<8x32xf32>
    %25 = math.tanh %24 : vector<8x32xf32>
    %cst_18 = arith.constant dense<0.000000e+00> : vector<8x1xf32>
    %26 = tpu.matmul %25, %1, %cst_18 {dimension_numbers = #tpu.dot_dimension_numbers<[1], [0], [0], [1], [0, 0, 1, 1], [], []>} : vector<8x32xf32>, vector<32x1xf32>, vector<8x1xf32> -> vector<8x1xf32>
    %c1_i32 = arith.constant 1 : i32
    %27 = vector.broadcast %c1_i32 : i32 to vector<8x8xi32>
    %28 = arith.cmpi eq, %8, %27 : vector<8x8xi32>
    %29 = vector.shape_cast %26 : vector<8x1xf32> to vector<8x1xf32>
    %30 = vector.broadcast %29 : vector<8x1xf32> to vector<8x8xf32>
    %31 = arith.select %28, %30, %20 : vector<8x8xi1>, vector<8x8xf32>
    %c2 = arith.constant 2 : index
    %c0_19 = arith.constant 0 : index
    %c0_20 = arith.constant 0 : index
    %32 = vector.load %arg2[%c2, %c0_19, %c0_20] : memref<8x8x64xf32, #tpu.memory_space<vmem>>, vector<1x8x64xf32>
    %33 = vector.shape_cast %32 : vector<1x8x64xf32> to vector<8x64xf32>
    %cst_21 = arith.constant dense<0.000000e+00> : vector<8x32xf32>
    %34 = tpu.matmul %33, %0, %cst_21 {dimension_numbers = #tpu.dot_dimension_numbers<[1], [0], [0], [1], [0, 0, 1, 1], [], []>} : vector<8x64xf32>, vector<64x32xf32>, vector<8x32xf32> -> vector<8x32xf32>
    %35 = arith.addf %7, %34 : vector<8x32xf32>
    %36 = math.tanh %35 : vector<8x32xf32>
    %cst_22 = arith.constant dense<0.000000e+00> : vector<8x1xf32>
    %37 = tpu.matmul %36, %1, %cst_22 {dimension_numbers = #tpu.dot_dimension_numbers<[1], [0], [0], [1], [0, 0, 1, 1], [], []>} : vector<8x32xf32>, vector<32x1xf32>, vector<8x1xf32> -> vector<8x1xf32>
    %c2_i32 = arith.constant 2 : i32
    %38 = vector.broadcast %c2_i32 : i32 to vector<8x8xi32>
    %39 = arith.cmpi eq, %8, %38 : vector<8x8xi32>
    %40 = vector.shape_cast %37 : vector<8x1xf32> to vector<8x1xf32>
    %41 = vector.broadcast %40 : vector<8x1xf32> to vector<8x8xf32>
    %42 = arith.select %39, %41, %31 : vector<8x8xi1>, vector<8x8xf32>
    %c3 = arith.constant 3 : index
    %c0_23 = arith.constant 0 : index
    %c0_24 = arith.constant 0 : index
    %43 = vector.load %arg2[%c3, %c0_23, %c0_24] : memref<8x8x64xf32, #tpu.memory_space<vmem>>, vector<1x8x64xf32>
    %44 = vector.shape_cast %43 : vector<1x8x64xf32> to vector<8x64xf32>
    %cst_25 = arith.constant dense<0.000000e+00> : vector<8x32xf32>
    %45 = tpu.matmul %44, %0, %cst_25 {dimension_numbers = #tpu.dot_dimension_numbers<[1], [0], [0], [1], [0, 0, 1, 1], [], []>} : vector<8x64xf32>, vector<64x32xf32>, vector<8x32xf32> -> vector<8x32xf32>
    %46 = arith.addf %7, %45 : vector<8x32xf32>
    %47 = math.tanh %46 : vector<8x32xf32>
    %cst_26 = arith.constant dense<0.000000e+00> : vector<8x1xf32>
    %48 = tpu.matmul %47, %1, %cst_26 {dimension_numbers = #tpu.dot_dimension_numbers<[1], [0], [0], [1], [0, 0, 1, 1], [], []>} : vector<8x32xf32>, vector<32x1xf32>, vector<8x1xf32> -> vector<8x1xf32>
    %c3_i32 = arith.constant 3 : i32
    %49 = vector.broadcast %c3_i32 : i32 to vector<8x8xi32>
    %50 = arith.cmpi eq, %8, %49 : vector<8x8xi32>
    %51 = vector.shape_cast %48 : vector<8x1xf32> to vector<8x1xf32>
    %52 = vector.broadcast %51 : vector<8x1xf32> to vector<8x8xf32>
    %53 = arith.select %50, %52, %42 : vector<8x8xi1>, vector<8x8xf32>
    %c4 = arith.constant 4 : index
    %c0_27 = arith.constant 0 : index
    %c0_28 = arith.constant 0 : index
    %54 = vector.load %arg2[%c4, %c0_27, %c0_28] : memref<8x8x64xf32, #tpu.memory_space<vmem>>, vector<1x8x64xf32>
    %55 = vector.shape_cast %54 : vector<1x8x64xf32> to vector<8x64xf32>
    %cst_29 = arith.constant dense<0.000000e+00> : vector<8x32xf32>
    %56 = tpu.matmul %55, %0, %cst_29 {dimension_numbers = #tpu.dot_dimension_numbers<[1], [0], [0], [1], [0, 0, 1, 1], [], []>} : vector<8x64xf32>, vector<64x32xf32>, vector<8x32xf32> -> vector<8x32xf32>
    %57 = arith.addf %7, %56 : vector<8x32xf32>
    %58 = math.tanh %57 : vector<8x32xf32>
    %cst_30 = arith.constant dense<0.000000e+00> : vector<8x1xf32>
    %59 = tpu.matmul %58, %1, %cst_30 {dimension_numbers = #tpu.dot_dimension_numbers<[1], [0], [0], [1], [0, 0, 1, 1], [], []>} : vector<8x32xf32>, vector<32x1xf32>, vector<8x1xf32> -> vector<8x1xf32>
    %c4_i32 = arith.constant 4 : i32
    %60 = vector.broadcast %c4_i32 : i32 to vector<8x8xi32>
    %61 = arith.cmpi eq, %8, %60 : vector<8x8xi32>
    %62 = vector.shape_cast %59 : vector<8x1xf32> to vector<8x1xf32>
    %63 = vector.broadcast %62 : vector<8x1xf32> to vector<8x8xf32>
    %64 = arith.select %61, %63, %53 : vector<8x8xi1>, vector<8x8xf32>
    %c5 = arith.constant 5 : index
    %c0_31 = arith.constant 0 : index
    %c0_32 = arith.constant 0 : index
    %65 = vector.load %arg2[%c5, %c0_31, %c0_32] : memref<8x8x64xf32, #tpu.memory_space<vmem>>, vector<1x8x64xf32>
    %66 = vector.shape_cast %65 : vector<1x8x64xf32> to vector<8x64xf32>
    %cst_33 = arith.constant dense<0.000000e+00> : vector<8x32xf32>
    %67 = tpu.matmul %66, %0, %cst_33 {dimension_numbers = #tpu.dot_dimension_numbers<[1], [0], [0], [1], [0, 0, 1, 1], [], []>} : vector<8x64xf32>, vector<64x32xf32>, vector<8x32xf32> -> vector<8x32xf32>
    %68 = arith.addf %7, %67 : vector<8x32xf32>
    %69 = math.tanh %68 : vector<8x32xf32>
    %cst_34 = arith.constant dense<0.000000e+00> : vector<8x1xf32>
    %70 = tpu.matmul %69, %1, %cst_34 {dimension_numbers = #tpu.dot_dimension_numbers<[1], [0], [0], [1], [0, 0, 1, 1], [], []>} : vector<8x32xf32>, vector<32x1xf32>, vector<8x1xf32> -> vector<8x1xf32>
    %c5_i32 = arith.constant 5 : i32
    %71 = vector.broadcast %c5_i32 : i32 to vector<8x8xi32>
    %72 = arith.cmpi eq, %8, %71 : vector<8x8xi32>
    %73 = vector.shape_cast %70 : vector<8x1xf32> to vector<8x1xf32>
    %74 = vector.broadcast %73 : vector<8x1xf32> to vector<8x8xf32>
    %75 = arith.select %72, %74, %64 : vector<8x8xi1>, vector<8x8xf32>
    %c6 = arith.constant 6 : index
    %c0_35 = arith.constant 0 : index
    %c0_36 = arith.constant 0 : index
    %76 = vector.load %arg2[%c6, %c0_35, %c0_36] : memref<8x8x64xf32, #tpu.memory_space<vmem>>, vector<1x8x64xf32>
    %77 = vector.shape_cast %76 : vector<1x8x64xf32> to vector<8x64xf32>
    %cst_37 = arith.constant dense<0.000000e+00> : vector<8x32xf32>
    %78 = tpu.matmul %77, %0, %cst_37 {dimension_numbers = #tpu.dot_dimension_numbers<[1], [0], [0], [1], [0, 0, 1, 1], [], []>} : vector<8x64xf32>, vector<64x32xf32>, vector<8x32xf32> -> vector<8x32xf32>
    %79 = arith.addf %7, %78 : vector<8x32xf32>
    %80 = math.tanh %79 : vector<8x32xf32>
    %cst_38 = arith.constant dense<0.000000e+00> : vector<8x1xf32>
    %81 = tpu.matmul %80, %1, %cst_38 {dimension_numbers = #tpu.dot_dimension_numbers<[1], [0], [0], [1], [0, 0, 1, 1], [], []>} : vector<8x32xf32>, vector<32x1xf32>, vector<8x1xf32> -> vector<8x1xf32>
    %c6_i32 = arith.constant 6 : i32
    %82 = vector.broadcast %c6_i32 : i32 to vector<8x8xi32>
    %83 = arith.cmpi eq, %8, %82 : vector<8x8xi32>
    %84 = vector.shape_cast %81 : vector<8x1xf32> to vector<8x1xf32>
    %85 = vector.broadcast %84 : vector<8x1xf32> to vector<8x8xf32>
    %86 = arith.select %83, %85, %75 : vector<8x8xi1>, vector<8x8xf32>
    %c7 = arith.constant 7 : index
    %c0_39 = arith.constant 0 : index
    %c0_40 = arith.constant 0 : index
    %87 = vector.load %arg2[%c7, %c0_39, %c0_40] : memref<8x8x64xf32, #tpu.memory_space<vmem>>, vector<1x8x64xf32>
    %88 = vector.shape_cast %87 : vector<1x8x64xf32> to vector<8x64xf32>
    %cst_41 = arith.constant dense<0.000000e+00> : vector<8x32xf32>
    %89 = tpu.matmul %88, %0, %cst_41 {dimension_numbers = #tpu.dot_dimension_numbers<[1], [0], [0], [1], [0, 0, 1, 1], [], []>} : vector<8x64xf32>, vector<64x32xf32>, vector<8x32xf32> -> vector<8x32xf32>
    %90 = arith.addf %7, %89 : vector<8x32xf32>
    %91 = math.tanh %90 : vector<8x32xf32>
    %cst_42 = arith.constant dense<0.000000e+00> : vector<8x1xf32>
    %92 = tpu.matmul %91, %1, %cst_42 {dimension_numbers = #tpu.dot_dimension_numbers<[1], [0], [0], [1], [0, 0, 1, 1], [], []>} : vector<8x32xf32>, vector<32x1xf32>, vector<8x1xf32> -> vector<8x1xf32>
    %c7_i32 = arith.constant 7 : i32
    %93 = vector.broadcast %c7_i32 : i32 to vector<8x8xi32>
    %94 = arith.cmpi eq, %8, %93 : vector<8x8xi32>
    %95 = vector.shape_cast %92 : vector<8x1xf32> to vector<8x1xf32>
    %96 = vector.broadcast %95 : vector<8x1xf32> to vector<8x8xf32>
    %97 = arith.select %94, %96, %86 : vector<8x8xi1>, vector<8x8xf32>
    %cst_43 = arith.constant dense<0xFF800000> : vector<8xf32>
    %98 = vector.multi_reduction <maximumf>, %97, %cst_43 [1] : vector<8x8xf32> to vector<8xf32>
    %99 = vector.shape_cast %98 : vector<8xf32> to vector<8x1xf32>
    %100 = vector.broadcast %99 : vector<8x1xf32> to vector<8x8xf32>
    %101 = arith.subf %97, %100 : vector<8x8xf32>
    %102 = math.exp %101 : vector<8x8xf32>
    %cst_44 = arith.constant dense<0.000000e+00> : vector<8xf32>
    %103 = vector.multi_reduction <add>, %102, %cst_44 [1] : vector<8x8xf32> to vector<8xf32>
    %104 = vector.shape_cast %103 : vector<8xf32> to vector<8x1xf32>
    %105 = vector.broadcast %104 : vector<8x1xf32> to vector<8x8xf32>
    %106 = arith.divf %102, %105 : vector<8x8xf32>
    %c0_45 = arith.constant 0 : index
    %c0_46 = arith.constant 0 : index
    %107 = vector.load %arg7[%c0_45, %c0_46] : memref<8x8xf32, #tpu.memory_space<vmem>>, vector<8x8xf32>
    tpu.vector_store %arg7[%c0_45, %c0_46], %106 {strides = array<i32>} : memref<8x8xf32, #tpu.memory_space<vmem>>, vector<8x8xf32>,
    return
  }
  func.func @transform_0(%arg0: i32) -> (i32, i32) {
    %c0_i32 = arith.constant 0 : i32
    %c0_i32_0 = arith.constant 0 : i32
    return %arg0, %c0_i32 : i32, i32
  }
  func.func @transform_1(%arg0: i32) -> (i32, i32, i32) {
    %c0_i32 = arith.constant 0 : i32
    %c0_i32_0 = arith.constant 0 : i32
    %c0_i32_1 = arith.constant 0 : i32
    return %c0_i32, %arg0, %c0_i32_0 : i32, i32, i32
  }
  func.func @transform_2(%arg0: i32) -> (i32, i32) {
    %c0_i32 = arith.constant 0 : i32
    %c0_i32_0 = arith.constant 0 : i32
    %c0_i32_1 = arith.constant 0 : i32
    return %c0_i32, %c0_i32_0 : i32, i32
  }
  func.func @transform_3(%arg0: i32) -> (i32, i32) {
    %c0_i32 = arith.constant 0 : i32
    %c0_i32_0 = arith.constant 0 : i32
    %c0_i32_1 = arith.constant 0 : i32
    return %c0_i32, %c0_i32_0 : i32, i32
  }
  func.func @transform_4(%arg0: i32) -> (i32, i32) {
    %c0_i32 = arith.constant 0 : i32
    %c0_i32_0 = arith.constant 0 : i32
    %c0_i32_1 = arith.constant 0 : i32
    return %c0_i32, %c0_i32_0 : i32, i32
  }
  func.func @transform_5(%arg0: i32) -> (i32, i32) {
    %c0_i32 = arith.constant 0 : i32
    %c0_i32_0 = arith.constant 0 : i32
    %c0_i32_1 = arith.constant 0 : i32
    return %c0_i32, %c0_i32_0 : i32, i32
  }
  func.func @transform_6(%arg0: i32) -> (i32, i32) {
    %c0_i32 = arith.constant 0 : i32
    %c0_i32_0 = arith.constant 0 : i32
    return %arg0, %c0_i32 : i32, i32
  }
}

</mosaic_0001>

<bundles_post_ra>
// kernel: _lambda_.1
= control target key start
LH: loop header
LB: loop body
LE: loop exit
PB: predicated region body
PF: predicated region fallthrough
CT: control target
= control target key end

     0   :  { %s929_s0 = inlined_call_operand.vmem [shape: f32[8,64], index: 0, kind: input, shape index: {}]   ;;  %s930_s1 = inlined_call_operand.vmem [shape: f32[8,8,64], index: 1, kind: input, shape index: {}]   ;;  %s931_s2 = inlined_call_operand.vmem [shape: f32[64,32], index: 2, kind: input, shape index: {}]   ;;  %s932_s3 = inlined_call_operand.vmem [shape: f32[64,32], index: 3, kind: input, shape index: {}]   ;;  %s933_s4 = inlined_call_operand.vmem [shape: f32[1,32], index: 4, kind: input, shape index: {}]   ;;  %s934_s5 = inlined_call_operand.vmem [shape: f32[32,1], index: 5, kind: input, shape index: {}]   ;;  %s935_s6 = inlined_call_operand.hbm [shape: f32[8,8], index: 6, kind: output, shape index: {}]  }
   0x1   :  { %v44_v0 = vld [vmem:[%s931_s2 + $0x38] sm:$0xff]  ;;  %v43_v2 = vld [vmem:[%s931_s2 + $0x30] sm:$0xff]  ;;  %v42_v4 = vld [vmem:[%s931_s2 + $0x28] sm:$0xff] }
   0x2   :  { %v692_v1 = vld [vmem:[%s932_s3 + $0x38] sm:$0xff]  ;;  %61 = vmatpush.msra.mxu0 %v44_v0  ;;  %v701_v3 = vld [vmem:[%s932_s3 + $0x30] sm:$0xff]  ;;  %v710_v5 = vld [vmem:[%s932_s3 + $0x28] sm:$0xff] }
   0x3   :  { %145 = vmatpush.msra.mxu3 %v692_v1  ;;  %87 = vmatpush.msra.mxu1 %v692_v1  ;;  %v41_v6 = vld [vmem:[%s931_s2 + $0x20] sm:$0xff]  ;;  %v40_v8 = vld [vmem:[%s931_s2 + $0x18] sm:$0xff] }
   0x4   :  { %62 = vmatpush.msra.mxu0 %v43_v2  ;;  %v720_v7 = vld [vmem:[%s932_s3 + $0x20] sm:$0xff]  ;;  %v730_v9 = vld [vmem:[%s932_s3 + $0x18] sm:$0xff] }
   0x5   :  { %146 = vmatpush.msra.mxu3 %v701_v3  ;;  %88 = vmatpush.msra.mxu1 %v701_v3 }
   0x6   :  { %63 = vmatpush.msra.mxu0 %v42_v4 }
   0x7   :  { %147 = vmatpush.msra.mxu3 %v710_v5  ;;  %89 = vmatpush.msra.mxu1 %v710_v5 }
   0x8   :  { %64 = vmatpush.msra.mxu0 %v41_v6 }
   0x9   :  { %148 = vmatpush.msra.mxu3 %v720_v7 }
   0xa   :  { %11 = vsyncpa [#allocation3], 0  ;;  %90 = vmatpush.msra.mxu1 %v720_v7  ;;  %v39_v10 = vld [vmem:[%s931_s2 + $0x10] sm:$0xff]  ;;  %65 = vmatpush.msra.mxu0 %v40_v8  ;;  %v38_v12 = vld [vmem:[%s931_s2 + $0x8] sm:$0xff]  ;;  %vm49_vm0 = vcmask 523264   ;;  %vm101_vm1 = vcmask 261120   ;;  %v73_v2 = vlaneseq }
   0xb   :  { %v740_v11 = vld [vmem:[%s932_s3 + $0x10] sm:$0xff]  ;;  %149 = vmatpush.msra.mxu3 %v730_v9  ;;  %v750_v13 = vld [vmem:[%s932_s3 + $0x8] sm:$0xff]  ;;  %v37_v14 = vld [vmem:[%s931_s2] sm:$0xff]  ;;  %v649_v36 = vmov 0   ;;  %vm531_vm10 = vcmask 64512   ;;  %s564_s7 = sshll.u32 %s935_s6, 4  ;;  %s565_s7 = int_to_ptr.hbm [resolvable:$true] %s564_s7 }
   0xc   :  { %91 = vmatpush.msra.mxu1 %v730_v9  ;;  %66 = vmatpush.msra.mxu0 %v39_v10  ;;  %v760_v15 = vld [vmem:[%s932_s3] sm:$0xff]  ;;  %v576_v17 = vld [vmem:[%s930_s1 + $0x8] sm:$0xff]  ;;  %v779_v19 = vld [vmem:[%s934_s5 + $0x18] sm:$0xff] }
   0xd   :  { %150 = vmatpush.msra.mxu3 %v740_v11  ;;  %v36_v16 = vld [vmem:[%s929_s0] sm:$0xff]  ;;  %117 = vmatpush.msra.mxu2 %v779_v19  ;;  %v579_v20 = vld [vmem:[%s930_s1 + $0x10] sm:$0xff]  ;;  %v588_v21 = vld [vmem:[%s930_s1 + $0x28] sm:$0xff] }
   0xe   :  { %92 = vmatpush.msra.mxu1 %v740_v11  ;;  %67 = vmatpush.msra.mxu0 %v38_v12  ;;  %v75_v18 = vld [vmem:[%s930_s1] sm:$0xff]  ;;  %v814_v22 = vld [vmem:[%s934_s5 + $0x10] sm:$0xff]  ;;  %v821_v23 = vld [vmem:[%s934_s5 + $0x8] sm:$0xff] }
   0xf   :  { %151 = vmatpush.msra.mxu3 %v750_v13  ;;  %118 = vmatpush.msra.mxu2 %v814_v22  ;;  %v830_v24 = vld [vmem:[%s934_s5] sm:$0xff]  ;;  %v582_v38 = vld [vmem:[%s930_s1 + $0x18] sm:$0xff]  ;;  %v591_v56 = vld [vmem:[%s930_s1 + $0x30] sm:$0xff] }
  0x10   :  { %93 = vmatpush.msra.mxu1 %v750_v13  ;;  %68 = vmatpush.msra.mxu0 %v37_v14  ;;  %v602_v25 = vld [vmem:[%s933_s4] ss:$0 sm:$0xff]  ;;  %v594_v43 = vld [vmem:[%s930_s1 + $0x38] sm:$0xff] }
  0x11   :  { %152 = vmatpush.msra.mxu3 %v760_v15  ;;  %573 = vmatmul.msk.f32.vlgmr.msra.gmra.mxu0 %vm49_vm0, %v36_v16  ;;  %v585_v39 = vld [vmem:[%s930_s1 + $0x20] sm:$0xff]  ;;  %s650_s1 = smov [#allocation2]  }
  0x12   :  { %577 = vmatmul.msk.f32.vlgmr.msra.gmra.mxu3 %vm49_vm0, %v576_v17  ;;  %202 = vmatpush.msrb.mxu0 %v692_v1  ;;  %s562_s28 = sshll.u32 %s650_s1, 4  ;;  %s563_s28 = int_to_ptr.vmem [resolvable:$true] %s562_s28 }
  0x13   :  { %94 = vmatpush.msra.mxu1 %v760_v15  ;;  %288 = vmatpush.msrb.mxu3 %v779_v19 }
  0x14   :  { %574 = vmatmul.msk.f32.vlgmr.msra.gmra.mxu1 %vm49_vm0, %v75_v18  ;;  %203 = vmatpush.msrb.mxu0 %v701_v3 }
  0x15   :  { %231 = vmatpush.msrb.mxu1 %v779_v19  ;;  %289 = vmatpush.msrb.mxu3 %v814_v22 }
  0x16   :  { %204 = vmatpush.msrb.mxu0 %v710_v5  ;;  %119 = vmatpush.msra.mxu2 %v821_v23 }
  0x17   :  { %232 = vmatpush.msrb.mxu1 %v814_v22  ;;  %290 = vmatpush.msrb.mxu3 %v821_v23 }
  0x18   :  { %205 = vmatpush.msrb.mxu0 %v720_v7  ;;  %120 = vmatpush.msra.mxu2 %v830_v24 }
  0x19   :  { %233 = vmatpush.msrb.mxu1 %v821_v23  ;;  %291 = vmatpush.msrb.mxu3 %v830_v24 }
  0x1a   :  { %206 = vmatpush.msrb.mxu0 %v730_v9  ;;  %174 = vmatpush.msrb.mxu2 %v779_v19 }
  0x1b   :  { %234 = vmatpush.msrb.mxu1 %v830_v24  ;;  %345 = vmatpush.msra.mxu3 %v779_v19 }
  0x1c   :  { %207 = vmatpush.msrb.mxu0 %v740_v11  ;;  %175 = vmatpush.msrb.mxu2 %v814_v22 }
  0x1d   :  { %316 = vmatpush.msra.mxu1 %v692_v1  ;;  %346 = vmatpush.msra.mxu3 %v814_v22 }
  0x1e   :  { %208 = vmatpush.msrb.mxu0 %v750_v13  ;;  %176 = vmatpush.msrb.mxu2 %v821_v23 }
  0x1f   :  { %317 = vmatpush.msra.mxu1 %v701_v3  ;;  %347 = vmatpush.msra.mxu3 %v821_v23 }
  0x20   :  { %209 = vmatpush.msrb.mxu0 %v760_v15  ;;  %177 = vmatpush.msrb.mxu2 %v830_v24 }
  0x21   :  { %580 = vmatmul.msk.f32.vlgmr.msrb.gmra.mxu0 %vm49_vm0, %v579_v20  ;;  %318 = vmatpush.msra.mxu1 %v710_v5 }
  0x22   :  { %373 = vmatpush.msra.mxu0 %v692_v1  ;;  %348 = vmatpush.msra.mxu3 %v830_v24 }
  0x23   :  { %319 = vmatpush.msra.mxu1 %v720_v7  ;;  %599 = vset.pattern.permute.xlu0 %v649_v36 }
  0x24   :  { %374 = vmatpush.msra.mxu0 %v701_v3  ;;  %600 = vset.pattern.permute.xlu1 %v649_v36 }
  0x25   :  { %320 = vmatpush.msra.mxu1 %v730_v9  ;;  %601 = vset.pattern.permute.xlu2 %v649_v36 }
  0x26   :  { %375 = vmatpush.msra.mxu0 %v710_v5 }
  0x27   :  { %321 = vmatpush.msra.mxu1 %v740_v11 }
  0x28   :  { %376 = vmatpush.msra.mxu0 %v720_v7 }
  0x29   :  { %322 = vmatpush.msra.mxu1 %v750_v13 }
  0x2a   :  { %377 = vmatpush.msra.mxu0 %v730_v9 }
  0x2b   :  { %323 = vmatpush.msra.mxu1 %v760_v15 }
  0x2c   :  { %378 = vmatpush.msra.mxu0 %v740_v11 }
  0x2e   :  { %379 = vmatpush.msra.mxu0 %v750_v13 }
  0x30   :  { %380 = vmatpush.msra.mxu0 %v760_v15 }
  0x31   :  { %589 = vmatmul.msk.f32.vlgmr.msra.gmra.mxu0 %vm49_vm0, %v588_v21 }
  0x32   :  { %516 = vmatpush.msrb.mxu0 %v779_v19 }
  0x34   :  { %517 = vmatpush.msrb.mxu0 %v814_v22 }
  0x36   :  { %518 = vmatpush.msrb.mxu0 %v821_v23 }
  0x38   :  { %519 = vmatpush.msrb.mxu0 %v830_v24 }
  0x8e   :  { %v70_v26 = vpop.f32.mrf.mxu0 }
  0x8f   :  { %v857_v27 = vadd.f32 %v602_v25, %v70_v26 }
  0x91   :  { %v96_v28 = vpop.f32.mrf.mxu1 }
  0x92   :  { %v99_v29 = vadd.f32 %v96_v28, %v857_v27 }
  0x94   :  { %603 = vtanh.f32 %v99_v29 }
  0x95   :  { %v154_v30 = vpop.f32.mrf.mxu3 }
  0x96   :  { %v157_v31 = vadd.f32 %v154_v30, %v857_v27 }
  0x98   :  { %605 = vtanh.f32 %v157_v31 }
  0x9a   :  { %v604_v32 = vpop.eup %603 }
  0x9b   :  { %575 = vmatmul.msk.f32.vlgmr.msra.gmra.mxu2 %vm101_vm1, %v604_v32 }
  0x9c   :  { %259 = vmatpush.msra.mxu2 %v692_v1 }
  0x9e   :  { %260 = vmatpush.msra.mxu2 %v701_v3  ;;  %v211_v33 = vpop.f32.mrf.mxu0  ;;  %v606_v35 = vpop.eup %605 }
  0x9f   :  { %v214_v34 = vadd.f32 %v211_v33, %v857_v27 }
  0xa0   :  { %261 = vmatpush.msra.mxu2 %v710_v5 }
  0xa1   :  { %607 = vtanh.f32 %v214_v34 }
  0xa2   :  { %262 = vmatpush.msra.mxu2 %v720_v7 }
  0xa3   :  { %578 = vmatmul.msk.f32.vlgmr.msrb.gmra.mxu2 %vm101_vm1, %v606_v35 }
  0xa4   :  { %263 = vmatpush.msra.mxu2 %v730_v9 }
  0xa6   :  { %264 = vmatpush.msra.mxu2 %v740_v11 }
  0xa7   :  { %v608_v37 = vpop.eup %607 }
  0xa8   :  { %265 = vmatpush.msra.mxu2 %v750_v13  ;;  %581 = vmatmul.msk.f32.vlgmr.msrb.gmra.mxu1 %vm101_vm1, %v608_v37 }
  0xa9   :  { %459 = vmatpush.msrb.mxu1 %v779_v19 }
  0xaa   :  { %266 = vmatpush.msra.mxu2 %v760_v15 }
  0xab   :  { %583 = vmatmul.msk.f32.vlgmr.msra.gmra.mxu2 %vm49_vm0, %v582_v38  ;;  %460 = vmatpush.msrb.mxu1 %v814_v22 }
  0xac   :  { %402 = vmatpush.msrb.mxu2 %v779_v19 }
  0xad   :  { %461 = vmatpush.msrb.mxu1 %v821_v23 }
  0xae   :  { %403 = vmatpush.msrb.mxu2 %v814_v22  ;;  %v382_v40 = vpop.f32.mrf.mxu0 }
  0xaf   :  { %v385_v41 = vadd.f32 %v382_v40, %v857_v27  ;;  %462 = vmatpush.msrb.mxu1 %v830_v24 }
  0xb0   :  { %404 = vmatpush.msrb.mxu2 %v821_v23  ;;  %586 = vmatmul.msk.f32.vlgmr.msra.gmra.mxu1 %vm49_vm0, %v585_v39 }
  0xb1   :  { %609 = vtanh.f32 %v385_v41 }
  0xb2   :  { %405 = vmatpush.msrb.mxu2 %v830_v24 }
  0xb4   :  { %487 = vmatpush.msra.mxu2 %v692_v1 }
  0xb6   :  { %488 = vmatpush.msra.mxu2 %v701_v3 }
  0xb7   :  { %v610_v42 = vpop.eup %609 }
  0xb8   :  { %489 = vmatpush.msra.mxu2 %v710_v5 }
  0xb9   :  { %590 = vmatmul.msk.f32.vlgmr.msrb.gmra.mxu2 %vm101_vm1, %v610_v42 }
  0xba   :  { %490 = vmatpush.msra.mxu2 %v720_v7 }
  0xbc   :  { %491 = vmatpush.msra.mxu2 %v730_v9 }
  0xbe   :  { %492 = vmatpush.msra.mxu2 %v740_v11 }
  0xc0   :  { %493 = vmatpush.msra.mxu2 %v750_v13 }
  0xc2   :  { %494 = vmatpush.msra.mxu2 %v760_v15 }
  0xc3   :  { %595 = vmatmul.msk.f32.vlgmr.msra.gmra.mxu2 %vm49_vm0, %v594_v43 }
 0x11e   :  { %v122_v44 = vpop.f32.mrf.mxu2 }
 0x11f   :  { %128 = vperm.xlu0 %599, %v122_v44  }
 0x125   :  { %v236_v45 = vpop.f32.mrf.mxu1 }
 0x126   :  { %v179_v46 = vpop.f32.mrf.mxu2  ;;  %242 = vperm.xlu1 %600, %v236_v45  }
 0x127   :  { %185 = vperm.xlu0 %599, %v179_v46  }
 0x12d   :  { %v325_v49 = vpop.f32.mrf.mxu1 }
 0x12e   :  { %v268_v47 = vpop.f32.mrf.mxu2  ;;  %v328_v50 = vadd.f32 %v325_v49, %v857_v27 }
 0x12f   :  { %v271_v48 = vadd.f32 %v268_v47, %v857_v27 }
 0x131   :  { %611 = vtanh.f32 %v271_v48 }
 0x132   :  { %613 = vtanh.f32 %v328_v50 }
 0x137   :  { %v612_v51 = vpop.eup %611 }
 0x138   :  { %584 = vmatmul.msk.f32.vlgmr.msrb.gmra.mxu3 %vm101_vm1, %v612_v51  ;;  %v614_v53 = vpop.eup %613 }
 0x139   :  { %430 = vmatpush.msrb.mxu3 %v692_v1 }
 0x13b   :  { %431 = vmatpush.msrb.mxu3 %v701_v3  ;;  %v74_v3 = vand.u32 127, %v73_v2 }
 0x13c   :  { %v407_v52 = vpop.f32.mrf.mxu2 }
 0x13d   :  { %432 = vmatpush.msrb.mxu3 %v710_v5  ;;  %vm125_vm2 = vcmp.eq.s32.totalorder %v74_v3, 0  ;;  %vm182_vm3 = vcmp.eq.s32.totalorder %v74_v3, 1  ;;  %vm239_vm4 = vcmp.eq.s32.totalorder %v74_v3, 2  ;;  %vm296_vm5 = vcmp.eq.s32.totalorder %v74_v3, 3 }
 0x13e   :  { %vm353_vm6 = vcmp.eq.s32.totalorder %v74_v3, 4  ;;  %vm410_vm7 = vcmp.eq.s32.totalorder %v74_v3, 5  ;;  %vm467_vm8 = vcmp.eq.s32.totalorder %v74_v3, 6  ;;  %vm524_vm9 = vcmp.eq.s32.totalorder %v74_v3, 7 }
 0x13f   :  { %433 = vmatpush.msrb.mxu3 %v720_v7 }
 0x140   :  { %587 = vmatmul.msk.f32.vlgmr.msra.gmra.mxu3 %vm101_vm1, %v614_v53 }
 0x141   :  { %434 = vmatpush.msrb.mxu3 %v730_v9 }
 0x143   :  { %435 = vmatpush.msrb.mxu3 %v740_v11 }
 0x145   :  { %436 = vmatpush.msrb.mxu3 %v750_v13 }
 0x146   :  { %v496_v54 = vpop.f32.mrf.mxu2 }
 0x147   :  { %v499_v55 = vadd.f32 %v496_v54, %v857_v27  ;;  %437 = vmatpush.msrb.mxu3 %v760_v15 }
 0x148   :  { %592 = vmatmul.msk.f32.vlgmr.msrb.gmra.mxu3 %vm49_vm0, %v591_v56 }
 0x149   :  { %615 = vtanh.f32 %v499_v55 }
 0x14f   :  { %v616_v57 = vpop.eup %615 }
 0x150   :  { %596 = vmatmul.msk.f32.vlgmr.msrb.gmra.mxu0 %vm101_vm1, %v616_v57 }
 0x191   :  { %v129_v1 = vpop.permute.xlu0 %128 }
 0x192   :  { %v131_v6 = vsel %vm125_vm2, %v129_v1, 0.0 }
 0x198   :  { %v243_v4 = vpop.permute.xlu1 %242 }
 0x199   :  { %v186_v5 = vpop.permute.xlu0 %185 }
 0x19a   :  { %v188_v8 = vsel %vm182_vm3, %v186_v5, %v131_v6 }
 0x19b   :  { %v245_v10 = vsel %vm239_vm4, %v243_v4, %v188_v8 }
 0x1bb   :  { %v293_v58 = vpop.f32.mrf.mxu3 }
 0x1bc   :  { %299 = vperm.xlu1 %600, %v293_v58  }
 0x1c3   :  { %v350_v59 = vpop.f32.mrf.mxu3 }
 0x1c4   :  { %356 = vperm.xlu2 %601, %v350_v59  }
 0x1cb   :  { %v439_v61 = vpop.f32.mrf.mxu3 }
 0x1cc   :  { %v442_v62 = vadd.f32 %v439_v61, %v857_v27  ;;  %413 = vperm.xlu2 %601, %v407_v52  }
 0x1cd   :  { %v521_v60 = vpop.f32.mrf.mxu0 }
 0x1ce   :  { %527 = vperm.xlu1 %600, %v521_v60   ;;  %617 = vtanh.f32 %v442_v62 }
 0x1d4   :  { %v618_v63 = vpop.eup %617 }
 0x1d5   :  { %593 = vmatmul.msk.f32.vlgmr.msrb.gmra.mxu1 %vm101_vm1, %v618_v63 }
 0x21e   :  { %v357_v7 = vpop.permute.xlu2 %356 }
 0x226   :  { %v414_v13 = vpop.permute.xlu2 %413 }
 0x22e   :  { %v300_v9 = vpop.permute.xlu1 %299 }
 0x22f   :  { %v302_v11 = vsel %vm296_vm5, %v300_v9, %v245_v10 }
 0x230   :  { %v359_v12 = vsel %vm353_vm6, %v357_v7, %v302_v11 }
 0x231   :  { %v416_v14 = vsel %vm410_vm7, %v414_v13, %v359_v12 }
 0x240   :  { %v528_v16 = vpop.permute.xlu1 %527 }
 0x252   :  { %v464_v0 = vpop.f32.mrf.mxu1 }
 0x253   :  { %470 = vperm.xlu0 %599, %v464_v0  }
 0x2c5   :  { %v471_v15 = vpop.permute.xlu0 %470 }
 0x2c6   :  { %v473_v17 = vsel %vm467_vm8, %v471_v15, %v416_v14 }
 0x2c7   :  { %v530_v18 = vsel %vm524_vm9, %v528_v16, %v473_v17 }
 0x2c8   :  { %v532_v19 = vsel %vm531_vm10, %v530_v18, -inf }
 0x2c9   :  { %533 = vmax.xlane.f32.xlu2 %v532_v19 }
 0x33c   :  { %v534_v20 = vpop.xlane.xlu2 %533 }
 0x33d   :  { %v535_v21 = vsub.f32 %v530_v18, %v534_v20 }
 0x33f   :  { %v536_v22 = vmul.f32 1.442695, %v535_v21 }
 0x341   :  { %619 = vpow2.f32 %v536_v22 }
 0x347   :  { %v620_v23 = vpop.eup %619 }
 0x348   :  { %v538_v24 = vsel %vm531_vm10, %v620_v23, 0.0 }
 0x349   :  { %539 = vadd.xlane.f32.xlu0 %v538_v24 }
 0x3bc   :  { %v540_v25 = vpop.xlane.xlu0 %539 }
 0x3bd   :  { %621 = vrcp.f32 %v540_v25  ;;  %v552_v29 = vand.u32 2147483648, %v540_v25  ;;  %v550_v31 = vand.u32 2147483647, %v540_v25  ;;  %vm546_vm12 = vweird.f32 %v540_v25 }
 0x3bf   :  { %v553_v33 = vor.u32 1.1754944e-38, %v552_v29  ;;  %vm551_vm14 = vcmp.eq.f32.partialorder %v550_v31, 8.507059e+37 }
 0x3c3   :  { %v622_v26 = vpop.eup %621 }
 0x3c4   :  { %v542_v27 = vmul.f32 %v622_v26, %v540_v25  ;;  %vm547_vm11 = vweird.f32 %v622_v26 }
 0x3c5   :  { %vm548_vm13 = vmor %vm546_vm12, %vm547_vm11 }
 0x3c6   :  { %v543_v28 = vsub.f32 1.0, %v542_v27 }
 0x3c8   :  { %v544_v30 = vmul.f32 %v622_v26, %v543_v28 }
 0x3ca   :  { %v545_v32 = vadd.f32 %v622_v26, %v544_v30 }
 0x3cc   :  { %v549_v34 = vsel %vm548_vm13, %v622_v26, %v545_v32 }
 0x3cd   :  { %v554_v35 = vsel %vm551_vm14, %v553_v33, %v549_v34 }
 0x3ce   :  { %v555_v36 = vmul.f32 %v620_v23, %v554_v35 }
 0x3d0   :  { %556 = vst.msk [vmem:[#allocation2] sm:$0xff] %vm531_vm10, %v555_v36 }
 0x3d1   :  { %567 = dma.vmem_to_hbm [thread:$0]  %s563_s28, 128, %s565_s7, [#allocation3]  }
 0x3d2   :  { %647 = dma.done.wait [#allocation3], 128  }
 0x3d3   :  { %648 = vsyncadd [#allocation3], 4294967168 }
 0x3d4   :  { %572 = vsyncpa [#allocation3], 1 }

</bundles_post_ra>
